<compile_context>
chip_gen: v6e
topology: v6e:2x2x1
jax: 0.10.0
libtpu: 0.0.40
codegen_flags: <defaults>
</compile_context>

<pallas_src>
import jax
import jax.numpy as jnp
from jax.experimental import pallas as pl
from jax.experimental.pallas import tpu as pltpu

HID_SIZE = 64
N_SLOTS = 2


def actor_kernel(xt_ref, w1_ref, b1_ref, w2_ref, b2_ref, ot_ref):
    # xt: (ob_len, TB)      -- lane dim = batch tile
    # w1: (hid, ob_len), b1: (hid, 1)        [PyTorch nn.Linear layout]
    # w2: (n_slots, hid), b2: (n_slots, 1)
    # ot: (n_slots, TB)     -- lane-dense output
    xt = xt_ref[...]

    h = jnp.dot(w1_ref[...], xt, preferred_element_type=jnp.float32) + b1_ref[...]
    h = jnp.maximum(h, 0.0)                                   # ReLU

    logits = (jnp.dot(w2_ref[...], h, preferred_element_type=jnp.float32)
              + b2_ref[...])                                  # (2, TB)

    # 2-class softmax == sigmoid of the logit difference (no XLU reductions).
    d = logits[0:1, :] - logits[1:2, :]                       # (1, TB)
    p0 = 1.0 / (1.0 + jnp.exp(-d))                            # exp -> EUP slot
    ot_ref[...] = jnp.concatenate([p0, 1.0 - p0], axis=0)     # (2, TB)


def actor_forward(x, w1, b1, w2, b2, *, block_b=512):
    """x: (B, ob_len); w1: (hid, ob_len); b1: (hid,); w2: (n_slots, hid); b2: (n_slots,)."""
    B, ob_len = x.shape
    hid = w1.shape[0]
    n_slots = w2.shape[0]

    # Lane dim carries batch: present a transposed input / collect transposed output.
    xt = x.T                               # (ob_len, B)
    b1c = b1.reshape(hid, 1)
    b2c = b2.reshape(n_slots, 1)

    # Batch tile: full extent if small (block == full dim is always legal),
    # otherwise a 128-aligned 512-row tile.
    tb = B if B <= block_b else block_b
    grid = (pl.cdiv(B, tb),)

    const = lambda shape: pl.BlockSpec(shape, lambda i: (0, 0))  # VMEM-resident weights

    out_t = pl.pallas_call(
        actor_kernel,
        out_shape=jax.ShapeDtypeStruct((n_slots, B), jnp.float32),
        grid_spec=pltpu.PrefetchScalarGridSpec(
            num_scalar_prefetch=0,
            grid=grid,
            in_specs=[
                pl.BlockSpec((ob_len, tb), lambda i: (0, i)),   # x tile (lane = batch)
                const((hid, ob_len)),                           # w1 resident
                const((hid, 1)),                                # b1 resident
                const((n_slots, hid)),                          # w2 resident
                const((n_slots, 1)),                            # b2 resident
            ],
            out_specs=pl.BlockSpec((n_slots, tb), lambda i: (0, i)),
        ),
        compiler_params=pltpu.CompilerParams(
            dimension_semantics=("parallel",)),                 # megacore on v7x
    )(xt, w1, b1c, w2, b2c)

    return out_t.T                                              # (B, n_slots)


def init_params(key, ob_len):
    # Same distribution family as nn.Linear's uniform(-1/sqrt(fan_in), 1/sqrt(fan_in)),
    # stored in PyTorch layout: weight (out, in), bias (out,).
    k1, k2, k3, k4 = jax.random.split(key, 4)
    lim1 = 1.0 / jnp.sqrt(ob_len)
    lim2 = 1.0 / jnp.sqrt(HID_SIZE)
    w1 = jax.random.uniform(k1, (HID_SIZE, ob_len), jnp.float32, -lim1, lim1)
    b1 = jax.random.uniform(k2, (HID_SIZE,), jnp.float32, -lim1, lim1)
    w2 = jax.random.uniform(k3, (N_SLOTS, HID_SIZE), jnp.float32, -lim2, lim2)
    b2 = jax.random.uniform(k4, (N_SLOTS,), jnp.float32, -lim2, lim2)
    return w1, b1, w2, b2


def actor_forward_ref(x, w1, b1, w2, b2):
    h = jnp.maximum(x @ w1.T + b1, 0.0)
    logits = h @ w2.T + b2
    return jax.nn.softmax(logits, axis=-1)


if __name__ == "__main__":
    key = jax.random.PRNGKey(0)
    k_x, k_p, k_x2 = jax.random.split(key, 3)

    batch = 8
    ob_len = 32
    x = jax.random.normal(k_x, (batch, ob_len), jnp.float32)
    w1, b1, w2, b2 = init_params(k_p, ob_len)

    # Small-batch path (single grid step, block == full batch).
    out = jax.block_until_ready(actor_forward(x, w1, b1, w2, b2))
    ref = actor_forward_ref(x, w1, b1, w2, b2)
    assert out.shape == (batch, N_SLOTS)
    assert jnp.allclose(out, ref, atol=1e-5, rtol=1e-5)
    assert jnp.allclose(jnp.sum(out, axis=-1), 1.0, atol=1e-5)

    # Large-batch path: exercises the batch grid (512-row tiles, resident weights).
    big_b = 1024
    x_big = jax.random.normal(k_x2, (big_b, ob_len), jnp.float32)
    out_big = jax.block_until_ready(actor_forward(x_big, w1, b1, w2, b2))
    ref_big = actor_forward_ref(x_big, w1, b1, w2, b2)
    assert out_big.shape == (big_b, N_SLOTS)
    assert jnp.allclose(out_big, ref_big, atol=1e-5, rtol=1e-5)

    print("KERNEL_OK")
</pallas_src>

<mosaic_0001>
module attributes {stable_mosaic.version = 11 : i64} {
  func.func @actor_kernel(%arg0: i32, %arg1: memref<32x8xf32, #tpu.memory_space<vmem>>, %arg2: memref<64x32xf32, #tpu.memory_space<vmem>>, %arg3: memref<64x1xf32, #tpu.memory_space<vmem>>, %arg4: memref<2x64xf32, #tpu.memory_space<vmem>>, %arg5: memref<2x1xf32, #tpu.memory_space<vmem>>, %arg6: memref<2x8xf32, #tpu.memory_space<vmem>>) attributes {dimension_semantics = [#tpu.dimension_semantics<parallel>], iteration_bounds = array<i64: 1>, scalar_prefetch = 0 : i64, scratch_operands = 0 : i64, tpu.core_type = #tpu.core_type<tc>, window_params = [{transform_indices = @transform_0, window_bounds = array<i64: 32, 8>}, {pipeline_mode = #tpu.pipeline_mode<synchronous>, transform_indices = @transform_1, window_bounds = array<i64: 64, 32>}, {pipeline_mode = #tpu.pipeline_mode<synchronous>, transform_indices = @transform_2, window_bounds = array<i64: 64, 1>}, {pipeline_mode = #tpu.pipeline_mode<synchronous>, transform_indices = @transform_3, window_bounds = array<i64: 2, 64>}, {pipeline_mode = #tpu.pipeline_mode<synchronous>, transform_indices = @transform_4, window_bounds = array<i64: 2, 1>}, {transform_indices = @transform_5, window_bounds = array<i64: 2, 8>}]} {
    %c0 = arith.constant 0 : index
    %c0_0 = arith.constant 0 : index
    %0 = vector.load %arg1[%c0, %c0_0] : memref<32x8xf32, #tpu.memory_space<vmem>>, vector<32x8xf32>
    %c0_1 = arith.constant 0 : index
    %c0_2 = arith.constant 0 : index
    %1 = vector.load %arg2[%c0_1, %c0_2] : memref<64x32xf32, #tpu.memory_space<vmem>>, vector<64x32xf32>
    %cst = arith.constant dense<0.000000e+00> : vector<64x8xf32>
    %2 = tpu.matmul %1, %0, %cst {dimension_numbers = #tpu.dot_dimension_numbers<[1], [0], [0], [1], [0, 0, 1, 1], [], []>} : vector<64x32xf32>, vector<32x8xf32>, vector<64x8xf32> -> vector<64x8xf32>
    %c0_3 = arith.constant 0 : index
    %c0_4 = arith.constant 0 : index
    %3 = vector.load %arg3[%c0_3, %c0_4] : memref<64x1xf32, #tpu.memory_space<vmem>>, vector<64x1xf32>
    %4 = vector.broadcast %3 : vector<64x1xf32> to vector<64x8xf32>
    %5 = arith.addf %2, %4 : vector<64x8xf32>
    %cst_5 = arith.constant 0.000000e+00 : f32
    %6 = vector.broadcast %cst_5 : f32 to vector<64x8xf32>
    %7 = arith.maximumf %5, %6 : vector<64x8xf32>
    %c0_6 = arith.constant 0 : index
    %c0_7 = arith.constant 0 : index
    %8 = vector.load %arg4[%c0_6, %c0_7] : memref<2x64xf32, #tpu.memory_space<vmem>>, vector<2x64xf32>
    %cst_8 = arith.constant dense<0.000000e+00> : vector<2x8xf32>
    %9 = tpu.matmul %8, %7, %cst_8 {dimension_numbers = #tpu.dot_dimension_numbers<[1], [0], [0], [1], [0, 0, 1, 1], [], []>} : vector<2x64xf32>, vector<64x8xf32>, vector<2x8xf32> -> vector<2x8xf32>
    %c0_9 = arith.constant 0 : index
    %c0_10 = arith.constant 0 : index
    %10 = vector.load %arg5[%c0_9, %c0_10] : memref<2x1xf32, #tpu.memory_space<vmem>>, vector<2x1xf32>
    %11 = vector.broadcast %10 : vector<2x1xf32> to vector<2x8xf32>
    %12 = arith.addf %9, %11 : vector<2x8xf32>
    %13 = vector.extract_strided_slice %12 {offsets = [0, 0], sizes = [1, 8], strides = [1, 1]} : vector<2x8xf32> to vector<1x8xf32>
    %14 = vector.extract_strided_slice %12 {offsets = [1, 0], sizes = [1, 8], strides = [1, 1]} : vector<2x8xf32> to vector<1x8xf32>
    %15 = arith.subf %13, %14 : vector<1x8xf32>
    %cst_11 = arith.constant 0.000000e+00 : f32
    %16 = vector.broadcast %cst_11 : f32 to vector<1x8xf32>
    %17 = arith.subf %16, %15 : vector<1x8xf32>
    %18 = math.exp %17 : vector<1x8xf32>
    %cst_12 = arith.constant 1.000000e+00 : f32
    %19 = vector.broadcast %cst_12 : f32 to vector<1x8xf32>
    %20 = arith.addf %19, %18 : vector<1x8xf32>
    %cst_13 = arith.constant 1.000000e+00 : f32
    %21 = vector.broadcast %cst_13 : f32 to vector<1x8xf32>
    %22 = arith.divf %21, %20 : vector<1x8xf32>
    %cst_14 = arith.constant 1.000000e+00 : f32
    %23 = vector.broadcast %cst_14 : f32 to vector<1x8xf32>
    %24 = arith.subf %23, %22 : vector<1x8xf32>
    %25 = tpu.concatenate %22, %24 in 0 : vector<1x8xf32>, vector<1x8xf32> -> vector<2x8xf32>
    %c0_15 = arith.constant 0 : index
    %c0_16 = arith.constant 0 : index
    %26 = vector.load %arg6[%c0_15, %c0_16] : memref<2x8xf32, #tpu.memory_space<vmem>>, vector<2x8xf32>
    tpu.vector_store %arg6[%c0_15, %c0_16], %25 {strides = array<i32>} : memref<2x8xf32, #tpu.memory_space<vmem>>, vector<2x8xf32>,
    return
  }
  func.func @transform_0(%arg0: i32) -> (i32, i32) {
    %c0_i32 = arith.constant 0 : i32
    %c0_i32_0 = arith.constant 0 : i32
    return %c0_i32, %arg0 : i32, i32
  }
  func.func @transform_1(%arg0: i32) -> (i32, i32) {
    %c0_i32 = arith.constant 0 : i32
    %c0_i32_0 = arith.constant 0 : i32
    %c0_i32_1 = arith.constant 0 : i32
    return %c0_i32, %c0_i32_0 : i32, i32
  }
  func.func @transform_2(%arg0: i32) -> (i32, i32) {
    %c0_i32 = arith.constant 0 : i32
    %c0_i32_0 = arith.constant 0 : i32
    %c0_i32_1 = arith.constant 0 : i32
    return %c0_i32, %c0_i32_0 : i32, i32
  }
  func.func @transform_3(%arg0: i32) -> (i32, i32) {
    %c0_i32 = arith.constant 0 : i32
    %c0_i32_0 = arith.constant 0 : i32
    %c0_i32_1 = arith.constant 0 : i32
    return %c0_i32, %c0_i32_0 : i32, i32
  }
  func.func @transform_4(%arg0: i32) -> (i32, i32) {
    %c0_i32 = arith.constant 0 : i32
    %c0_i32_0 = arith.constant 0 : i32
    %c0_i32_1 = arith.constant 0 : i32
    return %c0_i32, %c0_i32_0 : i32, i32
  }
  func.func @transform_5(%arg0: i32) -> (i32, i32) {
    %c0_i32 = arith.constant 0 : i32
    %c0_i32_0 = arith.constant 0 : i32
    return %c0_i32, %arg0 : i32, i32
  }
}

</mosaic_0001>

<bundles_post_ra>
// kernel: tpu_custom_call.1
= control target key start
LH: loop header
LB: loop body
LE: loop exit
PB: predicated region body
PF: predicated region fallthrough
CT: control target
= control target key end

     0   :  { %vm81_vm0 = vcmask 261120   ;;  %v433_v3 = vmov 0   ;;  %s544_s0 = inlined_call_operand.vmem [shape: f32[32,8], index: 0, kind: input, shape index: {}]   ;;  %s545_s1 = inlined_call_operand.vmem [shape: f32[64,32], index: 1, kind: input, shape index: {}]   ;;  %s546_s2 = inlined_call_operand.vmem [shape: f32[64,1], index: 2, kind: input, shape index: {}]   ;;  %s547_s3 = inlined_call_operand.vmem [shape: f32[2,64], index: 3, kind: input, shape index: {}]   ;;  %s548_s4 = inlined_call_operand.vmem [shape: f32[2,1], index: 4, kind: input, shape index: {}]   ;;  %s549_s5 = inlined_call_operand.hbm [shape: f32[2,8], index: 5, kind: output, shape index: {}]  }
   0x1   :  { %v24_v0 = vld [vmem:[%s544_s0 + $0x18] sm:$0xff]  ;;  %v23_v1 = vld [vmem:[%s544_s0 + $0x10] sm:$0xff]  ;;  %v25_v2 = vld [vmem:[%s545_s1] sm:$0xff]  ;;  %405 = vset.pattern.permute.xlu0 %v433_v3  ;;  %406 = vset.pattern.permute.xlu1 %v433_v3 }
   0x2   :  { %362 = vmatprep.subr.mxu0 %v24_v0  ;;  %v22_v4 = vld [vmem:[%s544_s0 + $0x8] sm:$0xff]  ;;  %370 = vmatprep.mubr.msk.f32.mxu0 %vm81_vm0, %v25_v2  ;;  %v21_v5 = vld [vmem:[%s544_s0] sm:$0xff]  ;;  %v40_v6 = vld [vmem:[%s546_s2 + $0x38] sm:$0xff] }
   0x3   :  { %363 = vmatpush3.msra.mxu0 %v24_v0  ;;  %v38_v7 = vld [vmem:[%s546_s2 + $0x28] sm:$0xff]  ;;  %78 = vperm.xlu0 %405, %v40_v6   ;;  %v39_v9 = vld [vmem:[%s546_s2 + $0x30] sm:$0xff]  ;;  %v37_v11 = vld [vmem:[%s546_s2 + $0x20] sm:$0xff] }
   0x4   :  { %364 = vmatprep.subr.mxu0 %v23_v1  ;;  %v26_v8 = vld [vmem:[%s545_s1 + $0x8] sm:$0xff]  ;;  %68 = vperm.xlu1 %406, %v38_v7   ;;  %v27_v10 = vld [vmem:[%s545_s1 + $0x10] sm:$0xff] }
   0x5   :  { %365 = vmatpush3.msra.mxu0 %v23_v1 }
   0x6   :  { %366 = vmatprep.subr.mxu0 %v22_v4 }
   0x7   :  { %367 = vmatpush3.msra.mxu0 %v22_v4 }
   0x8   :  { %368 = vmatprep.subr.mxu0 %v21_v5 }
   0x9   :  { %10 = vsyncpa [#allocation3], 0  ;;  %369 = vmatpush3.msra.mxu0 %v21_v5  ;;  %73 = vperm.xlu0 %405, %v39_v9   ;;  %v28_v12 = vld [vmem:[%s545_s1 + $0x18] sm:$0xff]  ;;  %v29_v14 = vld [vmem:[%s545_s1 + $0x20] sm:$0xff]  ;;  %v434_v22 = vmov 0.0   ;;  %vm435_vm1 = vmmov 0  }
   0xa   :  { %371 = vmatmul.mubr.msk.f32.vlgmr.msra.gmra.mxu0 %vm81_vm0, %v26_v8  ;;  %63 = vperm.xlu1 %406, %v37_v11   ;;  %v36_v13 = vld [vmem:[%s546_s2 + $0x18] sm:$0xff]  ;;  %v35_v15 = vld [vmem:[%s546_s2 + $0x10] sm:$0xff]  ;;  %v30_v16 = vld [vmem:[%s545_s1 + $0x28] sm:$0xff]  ;;  %vm226_vm2 = vcmask 523264   ;;  %vm314_vm3 = vcmask 1040384   ;;  %vm316_vm4 = vcmask 58368  }
   0xb   :  { %373 = vmatprep.mubr.msk.f32.mxu0 %vm81_vm0, %v27_v10  ;;  %v34_v17 = vld [vmem:[%s546_s2 + $0x8] sm:$0xff]  ;;  %v31_v18 = vld [vmem:[%s545_s1 + $0x30] sm:$0xff]  ;;  %v33_v19 = vld [vmem:[%s546_s2] sm:$0xff]  ;;  %382 = vmatprep.subr.mxu1 %v434_v22 }
   0xc   :  { %v32_v20 = vld [vmem:[%s545_s1 + $0x38] sm:$0xff]  ;;  %v220_v21 = vld [vmem:[%s548_s4] sm:$0x3]  ;;  %398 = vmatprep.mubr.msk.f32.mxu1 %vm435_vm1, %v434_v22  ;;  %s436_s4 = smov [#allocation2]  }
   0xd   :  { %58 = vperm.xlu0 %405, %v36_v13   ;;  %v219_v55 = vld [vmem:[%s547_s3] sm:$0x3]  ;;  %s324_s3 = sshll.u32 %s436_s4, 4  ;;  %s325_s3 = int_to_ptr.vmem [resolvable:$true] %s324_s3 }
   0xe   :  { %374 = vmatmul.mubr.msk.f32.gmra.mxu0 %vm81_vm0, %v28_v12  ;;  %53 = vperm.xlu1 %406, %v35_v15   ;;  %s411_s9 = scalar_lea.vmem %s325_s3, 32  ;;  %p416_p1 = scmp.lt.s32.totalorder %s325_s3, %s325_s3 }
   0xf   :  { %376 = vmatprep.mubr.msk.f32.mxu0 %vm81_vm0, %v29_v14  ;;  %p412_p0 = scmp.ne.s32.totalorder %s325_s3, %s411_s9  ;;  %p417_p2 = scmp.lt.s32.totalorder %s411_s9, %s411_s9 }
  0x11   :  { %48 = vperm.xlu0 %405, %v34_v17   ;;  %p418_p3 = por %p417_p2, %p416_p1 }
  0x12   :  { %377 = vmatmul.mubr.msk.f32.gmra.mxu0 %vm81_vm0, %v30_v16  ;;  %43 = vperm.xlu1 %406, %v33_v19  }
  0x13   :  { %379 = vmatprep.mubr.msk.f32.mxu0 %vm81_vm0, %v31_v18  ;;  %p419_p4 = pnand %p418_p3, %p412_p0 }
  0x15   :  { %223 = vperm.xlu0 %405, %v220_v21  }
  0x16   :  { %380 = vmatmul.mubr.msk.f32.gmra.mxu0 %vm81_vm0, %v32_v20 }
  0x7e   :  { %v79_v24 = vpop.permute.xlu0 %78 }
  0x7f   :  { %v69_v26 = vpop.permute.xlu1 %68 }
  0x84   :  { %v74_v29 = vpop.permute.xlu0 %73 }
  0x85   :  { %v64_v31 = vpop.permute.xlu1 %63 }
  0x88   :  { %v59_v35 = vpop.permute.xlu0 %58 }
  0x89   :  { %v54_v40 = vpop.permute.xlu1 %53 }
  0x8c   :  { %v49_v45 = vpop.permute.xlu0 %48 }
  0x8d   :  { %v44_v48 = vpop.permute.xlu1 %43 }
  0x90   :  { %v224_v56 = vpop.permute.xlu0 %223 }
  0xca   :  { %v372_v23 = vpop.f32.mrf.mxu0 }
  0xcb   :  { %v178_v49 = vadd.f32 %v372_v23, %v49_v45 }
  0xcc   :  { %v172_v25 = vpop.f32.mrf.mxu0 }
  0xcd   :  { %v173_v51 = vadd.f32 %v172_v25, %v44_v48  ;;  %v212_v53 = vmax.f32 %v178_v49, 0.0 }
  0xce   :  { %v375_v27 = vpop.f32.mrf.mxu0 }
  0xcf   :  { %v188_v43 = vadd.f32 %v375_v27, %v59_v35  ;;  %v211_v54 = vmax.f32 %v173_v51, 0.0 }
  0xd0   :  { %v182_v28 = vpop.f32.mrf.mxu0 }
  0xd1   :  { %v183_v46 = vadd.f32 %v182_v28, %v54_v40  ;;  %v214_v50 = vmax.f32 %v188_v43, 0.0 }
  0xd2   :  { %v378_v30 = vpop.f32.mrf.mxu0 }
  0xd3   :  { %v198_v37 = vadd.f32 %v378_v30, %v69_v26  ;;  %v213_v52 = vmax.f32 %v183_v46, 0.0 }
  0xd4   :  { %v192_v32 = vpop.f32.mrf.mxu0 }
  0xd5   :  { %v193_v41 = vadd.f32 %v192_v32, %v64_v31  ;;  %v216_v44 = vmax.f32 %v198_v37, 0.0 }
  0xd6   :  { %v381_v33 = vpop.f32.mrf.mxu0 }
  0xd7   :  { %v208_v34 = vadd.f32 %v381_v33, %v79_v24  ;;  %v215_v47 = vmax.f32 %v193_v41, 0.0 }
  0xd8   :  { %v202_v36 = vpop.f32.mrf.mxu0 }
  0xd9   :  { %v218_v38 = vmax.f32 %v208_v34, 0.0  ;;  %v203_v39 = vadd.f32 %v202_v36, %v74_v29 }
  0xdb   :  { %v217_v42 = vmax.f32 %v203_v39, 0.0  ;;  %383 = vmatpush3.msra.mxu1 %v218_v38 }
  0xdc   :  { %384 = vmatprep.subr.mxu1 %v434_v22 }
  0xdd   :  { %385 = vmatpush3.msra.mxu1 %v217_v42 }
  0xde   :  { %386 = vmatprep.subr.mxu1 %v434_v22 }
  0xdf   :  { %387 = vmatpush3.msra.mxu1 %v216_v44 }
  0xe0   :  { %388 = vmatprep.subr.mxu1 %v434_v22 }
  0xe1   :  { %389 = vmatpush3.msra.mxu1 %v215_v47 }
  0xe2   :  { %390 = vmatprep.subr.mxu1 %v434_v22 }
  0xe3   :  { %391 = vmatpush3.msra.mxu1 %v214_v50 }
  0xe4   :  { %392 = vmatprep.subr.mxu1 %v434_v22 }
  0xe5   :  { %393 = vmatpush3.msra.mxu1 %v213_v52 }
  0xe6   :  { %394 = vmatprep.subr.mxu1 %v434_v22 }
  0xe7   :  { %395 = vmatpush3.msra.mxu1 %v212_v53 }
  0xe8   :  { %396 = vmatprep.subr.mxu1 %v434_v22 }
  0xe9   :  { %397 = vmatpush3.msra.mxu1 %v211_v54 }
  0xea   :  { %399 = vmatmul.mubr.msk.f32.vlgmr.msra.gmra.mxu1 %vm226_vm2, %v219_v55 }
 0x1aa   :  { %v296_v57 = vpop.f32.mrf.mxu1 }
 0x1ab   :  { %v297_v58 = vadd.f32 %v296_v57, %v224_v56 }
 0x1ac   :  { %v400_v59 = vpop.f32.mrf.mxu1 }
 0x1ad   :  { %v301_v60 = vrot.slane %v297_v58, 1 }
 0x1af   :  { %v303_v61 = vsub.f32 %v297_v58, %v301_v60 }
 0x1b1   :  { %v304_v62 = vsub.f32 0.0, %v303_v61 }
 0x1b3   :  { %v305_v63 = vmul.f32 1.442695, %v304_v62 }
 0x1b5   :  { %407 = vpow2.f32 %v305_v63 }
 0x1c2   :  { %v408_v0 = vpop.eup %407 }
 0x1c3   :  { %v307_v1 = vadd.f32 1.0, %v408_v0 }
 0x1c5   :  { %409 = vrcp.f32 %v307_v1 }
 0x1d2   :  { %v410_v2 = vpop.eup %409 }
 0x1d3   :  { %v310_v3 = vsub.f32 1.0, %v410_v2 }
 0x1d5   :  { %v312_v4 = vrot.slane %v310_v3, 7 }
 0x1d7   :  { %v315_v5 = vsel %vm314_vm3, %v410_v2, %v312_v4 }
 0x1d8   :  { %317 = vst.msk [vmem:[#allocation2] sm:$0x3] %vm316_vm4, %v315_v5 }
 0x1d9   :  { %422 = shalt.err (!%p419_p4)
}
 0x1da   :  { %327 = dma.vmem_to_hbm [thread:$0]  %s325_s3, 32, %s549_s5, [#allocation3]  }
 0x1db   :  { %431 = dma.done.wait [#allocation3], 32  }
 0x1dc   :  { %432 = vsyncadd [#allocation3], 4294967264 }
 0x1dd   :  { %331 = vsyncpa [#allocation3], 1 }

</bundles_post_ra>
